<compile_context>
chip_gen: v7x
topology: tpu7x:2x2x1
jax: 0.10.0
libtpu: 0.0.40
codegen_flags: <defaults>
</compile_context>

<pallas_src>
import functools

import jax
import jax.numpy as jnp
import numpy as np
from jax import lax
from jax.experimental import pallas as pl
from jax.experimental.pallas import tpu as pltpu


# ----------------------------- Pallas kernels ------------------------------ #

def conv_mm_kernel(p_ref, w_ref, b_ref, o_ref, *, batch):
    # p_ref: [B, K, HoWo]   im2col patches, HoWo on the lane axis
    # w_ref: [Cout, K]      PyTorch OIHW weight flattened
    # b_ref: [Cout, 1]
    # o_ref: [B, Cout, HoWo]  conv output already in NCHW flatten (capsule) order
    w = w_ref[...]
    bias = b_ref[...]
    for b in range(batch):  # static unroll; B is tiny, weights stay resident in vregs/VMEM
        acc = jnp.dot(w, p_ref[b], preferred_element_type=jnp.float32)  # [Cout, HoWo] on MXU
        o_ref[b] = acc + bias                                           # lane-dense store


def squash_kernel(x_ref, o_ref):
    # x_ref / o_ref: [B, num_caps, dim_caps]
    x = x_ref[...]
    sq = jnp.sum(x * x, axis=-1, keepdims=True)          # ||v||^2 per capsule
    norm = jnp.sqrt(sq)
    scale = sq / (1.0 + sq) / (norm + 1e-8)               # matches torch squash
    o_ref[...] = scale * x


# ------------------------------ JAX glue ----------------------------------- #

def im2col_t(x, k, stride, padding):
    """x: [B, C, H, W] -> patchesT [B, C*k*k, Ho*Wo] with K in (ci, kh, kw) order (matches OIHW)."""
    B, C, H, W = x.shape
    if padding > 0:
        x = jnp.pad(x, ((0, 0), (0, 0), (padding, padding), (padding, padding)))
    Hp, Wp = H + 2 * padding, W + 2 * padding
    Ho = (Hp - k) // stride + 1
    Wo = (Wp - k) // stride + 1
    patches = []
    for i in range(k):
        for j in range(k):
            patches.append(x[:, :, i:i + stride * Ho:stride, j:j + stride * Wo:stride])
    p = jnp.stack(patches, axis=2)            # [B, C, k*k, Ho, Wo]
    p = p.reshape(B, C * k * k, Ho * Wo)      # [B, K, HoWo]  (no transpose needed anymore)
    return p, Ho, Wo


def primary_capsule_forward(x, weight, bias, dim_caps, stride=1, padding=0):
    """x: [B, Cin, H, W], weight: [Cout, Cin, k, k] (PyTorch OIHW), bias: [Cout]."""
    B, Cin, H, W = x.shape
    Cout, _, k, _ = weight.shape

    patches_t, Ho, Wo = im2col_t(x, k, stride, padding)     # [B, K, HoWo]
    HoWo = Ho * Wo
    K = Cin * k * k

    w2 = weight.reshape(Cout, K).astype(jnp.float32)        # [Cout, K]
    b2 = bias.reshape(Cout, 1).astype(jnp.float32)          # [Cout, 1]
    patches_t = patches_t.astype(jnp.float32)

    # ---- conv as a transposed matmul (single grid step, batch unrolled in-kernel) ----
    conv_out = pl.pallas_call(
        functools.partial(conv_mm_kernel, batch=B),
        out_shape=jax.ShapeDtypeStruct((B, Cout, HoWo), jnp.float32),
        grid=(1,),
        in_specs=[
            pl.BlockSpec((B, K, HoWo), lambda i: (0, 0, 0)),
            pl.BlockSpec((Cout, K), lambda i: (0, 0)),
            pl.BlockSpec((Cout, 1), lambda i: (0, 0)),
        ],
        out_specs=pl.BlockSpec((B, Cout, HoWo), lambda i: (0, 0, 0)),
        compiler_params=pltpu.CompilerParams(dimension_semantics=("arbitrary",)),
    )(patches_t, w2, b2)

    # ---- free row-major reshape into PyTorch capsule order: [B, Cout, Ho, Wo] -> [B, -1, dim_caps]
    num_caps = (Cout * HoWo) // dim_caps
    caps = conv_out.reshape(B, num_caps, dim_caps)

    # ---- squash (single grid step, whole tensor as one block) ----
    out = pl.pallas_call(
        squash_kernel,
        out_shape=jax.ShapeDtypeStruct((B, num_caps, dim_caps), jnp.float32),
        grid=(1,),
        in_specs=[pl.BlockSpec((B, num_caps, dim_caps), lambda i: (0, 0, 0))],
        out_specs=pl.BlockSpec((B, num_caps, dim_caps), lambda i: (0, 0, 0)),
        compiler_params=pltpu.CompilerParams(dimension_semantics=("arbitrary",)),
    )(caps)
    return out


def reference_forward(x, weight, bias, dim_caps, stride=1, padding=0):
    """Pure-JAX reference reproducing the PyTorch module."""
    conv = lax.conv_general_dilated(
        x.astype(jnp.float32), weight.astype(jnp.float32),
        window_strides=(stride, stride),
        padding=[(padding, padding), (padding, padding)],
        dimension_numbers=("NCHW", "OIHW", "NCHW"),
    ) + bias.reshape(1, -1, 1, 1)
    B = x.shape[0]
    caps = conv.reshape(B, -1, dim_caps)
    sq = jnp.sum(caps * caps, axis=-1, keepdims=True)
    norm = jnp.sqrt(sq)
    scale = sq / (1.0 + sq) / (norm + 1e-8)
    return scale * caps


# --------------------------------- main ------------------------------------ #

if __name__ == "__main__":
    # Small shapes consistent with the module:
    #   batch=2, in_channels=4, spatial=16x16, out_channels=8, kernel=3, stride=1, pad=0,
    #   dim_caps=8  ->  num_caps = 8*14*14/8 = 196
    B, Cin, H, W = 2, 4, 16, 16
    Cout, k, stride, padding = 8, 3, 1, 0
    dim_caps = 8

    key = jax.random.PRNGKey(0)
    kx, kw, kb = jax.random.split(key, 3)
    x = jax.random.normal(kx, (B, Cin, H, W), dtype=jnp.float32)
    # Deterministic synthetic conv parameters (PyTorch-like uniform init range).
    fan_in = Cin * k * k
    bound = 1.0 / np.sqrt(fan_in)
    weight = jax.random.uniform(kw, (Cout, Cin, k, k), minval=-bound, maxval=bound,
                                dtype=jnp.float32)
    bias = jax.random.uniform(kb, (Cout,), minval=-bound, maxval=bound, dtype=jnp.float32)

    out = primary_capsule_forward(x, weight, bias, dim_caps, stride, padding)
    out = jax.block_until_ready(out)

    ref = reference_forward(x, weight, bias, dim_caps, stride, padding)
    assert out.shape == ref.shape == (B, (Cout * 14 * 14) // dim_caps, dim_caps)
    np.testing.assert_allclose(np.asarray(out), np.asarray(ref), rtol=1e-4, atol=1e-4)

    print("KERNEL_OK")
</pallas_src>

<mosaic_0001>
module attributes {stable_mosaic.version = 11 : i64} {
  func.func @conv_mm_kernel(%arg0: i32, %arg1: memref<2x36x196xf32, #tpu.memory_space<vmem>>, %arg2: memref<8x36xf32, #tpu.memory_space<vmem>>, %arg3: memref<8x1xf32, #tpu.memory_space<vmem>>, %arg4: memref<2x8x196xf32, #tpu.memory_space<vmem>>) attributes {dimension_semantics = [#tpu.dimension_semantics<arbitrary>], iteration_bounds = array<i64: 1>, scalar_prefetch = 0 : i64, scratch_operands = 0 : i64, tpu.core_type = #tpu.core_type<tc>, window_params = [{pipeline_mode = #tpu.pipeline_mode<synchronous>, transform_indices = @transform_0, window_bounds = array<i64: 2, 36, 196>}, {pipeline_mode = #tpu.pipeline_mode<synchronous>, transform_indices = @transform_1, window_bounds = array<i64: 8, 36>}, {pipeline_mode = #tpu.pipeline_mode<synchronous>, transform_indices = @transform_2, window_bounds = array<i64: 8, 1>}, {pipeline_mode = #tpu.pipeline_mode<synchronous>, transform_indices = @transform_3, window_bounds = array<i64: 2, 8, 196>}]} {
    %c0 = arith.constant 0 : index
    %c0_0 = arith.constant 0 : index
    %0 = vector.load %arg2[%c0, %c0_0] : memref<8x36xf32, #tpu.memory_space<vmem>>, vector<8x36xf32>
    %c0_1 = arith.constant 0 : index
    %c0_2 = arith.constant 0 : index
    %1 = vector.load %arg3[%c0_1, %c0_2] : memref<8x1xf32, #tpu.memory_space<vmem>>, vector<8x1xf32>
    %c0_3 = arith.constant 0 : index
    %c0_4 = arith.constant 0 : index
    %c0_5 = arith.constant 0 : index
    %2 = vector.load %arg1[%c0_3, %c0_4, %c0_5] : memref<2x36x196xf32, #tpu.memory_space<vmem>>, vector<1x36x196xf32>
    %3 = vector.shape_cast %2 : vector<1x36x196xf32> to vector<36x196xf32>
    %cst = arith.constant dense<0.000000e+00> : vector<8x196xf32>
    %4 = tpu.matmul %0, %3, %cst {dimension_numbers = #tpu.dot_dimension_numbers<[1], [0], [0], [1], [0, 0, 1, 1], [], []>} : vector<8x36xf32>, vector<36x196xf32>, vector<8x196xf32> -> vector<8x196xf32>
    %5 = vector.broadcast %1 : vector<8x1xf32> to vector<8x196xf32>
    %6 = arith.addf %4, %5 : vector<8x196xf32>
    %c0_6 = arith.constant 0 : index
    %c0_7 = arith.constant 0 : index
    %c0_8 = arith.constant 0 : index
    %7 = vector.load %arg4[%c0_6, %c0_7, %c0_8] : memref<2x8x196xf32, #tpu.memory_space<vmem>>, vector<1x8x196xf32>
    %8 = vector.shape_cast %7 : vector<1x8x196xf32> to vector<8x196xf32>
    %9 = vector.shape_cast %6 : vector<8x196xf32> to vector<1x8x196xf32>
    tpu.vector_store %arg4[%c0_6, %c0_7, %c0_8], %9 {strides = array<i32>} : memref<2x8x196xf32, #tpu.memory_space<vmem>>, vector<1x8x196xf32>,
    %c1 = arith.constant 1 : index
    %c0_9 = arith.constant 0 : index
    %c0_10 = arith.constant 0 : index
    %10 = vector.load %arg1[%c1, %c0_9, %c0_10] : memref<2x36x196xf32, #tpu.memory_space<vmem>>, vector<1x36x196xf32>
    %11 = vector.shape_cast %10 : vector<1x36x196xf32> to vector<36x196xf32>
    %cst_11 = arith.constant dense<0.000000e+00> : vector<8x196xf32>
    %12 = tpu.matmul %0, %11, %cst_11 {dimension_numbers = #tpu.dot_dimension_numbers<[1], [0], [0], [1], [0, 0, 1, 1], [], []>} : vector<8x36xf32>, vector<36x196xf32>, vector<8x196xf32> -> vector<8x196xf32>
    %13 = vector.broadcast %1 : vector<8x1xf32> to vector<8x196xf32>
    %14 = arith.addf %12, %13 : vector<8x196xf32>
    %c1_12 = arith.constant 1 : index
    %c0_13 = arith.constant 0 : index
    %c0_14 = arith.constant 0 : index
    %15 = vector.load %arg4[%c1_12, %c0_13, %c0_14] : memref<2x8x196xf32, #tpu.memory_space<vmem>>, vector<1x8x196xf32>
    %16 = vector.shape_cast %15 : vector<1x8x196xf32> to vector<8x196xf32>
    %17 = vector.shape_cast %14 : vector<8x196xf32> to vector<1x8x196xf32>
    tpu.vector_store %arg4[%c1_12, %c0_13, %c0_14], %17 {strides = array<i32>} : memref<2x8x196xf32, #tpu.memory_space<vmem>>, vector<1x8x196xf32>,
    return
  }
  func.func @transform_0(%arg0: i32) -> (i32, i32, i32) {
    %c0_i32 = arith.constant 0 : i32
    %c0_i32_0 = arith.constant 0 : i32
    %c0_i32_1 = arith.constant 0 : i32
    %c0_i32_2 = arith.constant 0 : i32
    return %c0_i32, %c0_i32_0, %c0_i32_1 : i32, i32, i32
  }
  func.func @transform_1(%arg0: i32) -> (i32, i32) {
    %c0_i32 = arith.constant 0 : i32
    %c0_i32_0 = arith.constant 0 : i32
    %c0_i32_1 = arith.constant 0 : i32
    return %c0_i32, %c0_i32_0 : i32, i32
  }
  func.func @transform_2(%arg0: i32) -> (i32, i32) {
    %c0_i32 = arith.constant 0 : i32
    %c0_i32_0 = arith.constant 0 : i32
    %c0_i32_1 = arith.constant 0 : i32
    return %c0_i32, %c0_i32_0 : i32, i32
  }
  func.func @transform_3(%arg0: i32) -> (i32, i32, i32) {
    %c0_i32 = arith.constant 0 : i32
    %c0_i32_0 = arith.constant 0 : i32
    %c0_i32_1 = arith.constant 0 : i32
    %c0_i32_2 = arith.constant 0 : i32
    return %c0_i32, %c0_i32_0, %c0_i32_1 : i32, i32, i32
  }
}

</mosaic_0001>

<bundles_post_ra>
// kernel: tpu_custom_call.1
= control target key start
LH: loop header
LB: loop body
LE: loop exit
PB: predicated region body
PF: predicated region fallthrough
CT: control target
= control target key end

     0   :  { %v286_v7 = vmov 0.0   ;;  %v287_v13 = vmov 0   ;;  %vm36_vm0 = vcmask 1043456   ;;  %s389_s0 = inlined_call_operand.vmem [shape: f32[2,36,196], index: 0, kind: input, shape index: {}]   ;;  %s390_s1 = inlined_call_operand.vmem [shape: f32[8,36], index: 1, kind: input, shape index: {}]   ;;  %s391_s2 = inlined_call_operand.vmem [shape: f32[8,1], index: 2, kind: input, shape index: {}]   ;;  %s392_s3 = inlined_call_operand.hbm [shape: f32[2,8,196], index: 3, kind: output, shape index: {}]  }
   0x1   :  { %v18_v0 = vld [vmem:[%s389_s0 + $0x8] sm:$0xff]  ;;  %v20_v1 = vld [vmem:[%s389_s0 + $0x18] sm:$0xff]  ;;  %v17_v5 = vld [vmem:[%s389_s0] sm:$0xff]  ;;  %107 = vmatprep.mubr.f32.mxu0 %v286_v7  ;;  %198 = vmatprep.mubr.f32.mxu1 %v286_v7 }
   0x2   :  { %v228_v2 = vld [vmem:[%s389_s0 + $0x58] sm:$0xff]  ;;  %v240_v3 = vpack.c.bf16 %v20_v1, %v18_v0  ;;  %v230_v4 = vld [vmem:[%s389_s0 + $0x68] sm:$0xff]  ;;  %v19_v6 = vld [vmem:[%s389_s0 + $0x10] sm:$0xff]  ;;  %261 = vset.pattern.permute.xlu0 %v287_v13 }
   0x3   :  { %v248_v8 = vpack.c.bf16 %v230_v4, %v228_v2  ;;  %v242_v9 = vpack.c.bf16 %v19_v6, %v17_v5  ;;  %v227_v10 = vld [vmem:[%s389_s0 + $0x50] sm:$0xff]  ;;  %v229_v11 = vld [vmem:[%s389_s0 + $0x60] sm:$0xff]  ;;  %v22_v12 = vld [vmem:[%s389_s0 + $0x28] sm:$0xff] }
   0x4   :  { %241 = vmatprep.subr.bf16.mxu0 %v240_v3  ;;  %v250_v14 = vpack.c.bf16 %v229_v11, %v227_v10  ;;  %v24_v15 = vld [vmem:[%s389_s0 + $0x38] sm:$0xff]  ;;  %v234_v17 = vld [vmem:[%s389_s0 + $0x88] sm:$0xff]  ;;  %v21_v20 = vld [vmem:[%s389_s0 + $0x20] sm:$0xff] }
   0x5   :  { %v232_v16 = vld [vmem:[%s389_s0 + $0x78] sm:$0xff]  ;;  %249 = vmatprep.subr.bf16.mxu1 %v248_v8  ;;  %243 = vmatpush1.bf16.msra.mxu0 %v242_v9  ;;  %v244_v18 = vpack.c.bf16 %v24_v15, %v22_v12  ;;  %v23_v21 = vld [vmem:[%s389_s0 + $0x30] sm:$0xff]  ;;  %v233_v24 = vld [vmem:[%s389_s0 + $0x80] sm:$0xff] }
   0x6   :  { %v252_v19 = vpack.c.bf16 %v234_v17, %v232_v16  ;;  %v231_v22 = vld [vmem:[%s389_s0 + $0x70] sm:$0xff]  ;;  %251 = vmatpush1.bf16.msra.mxu1 %v250_v14  ;;  %v246_v23 = vpack.c.bf16 %v23_v21, %v21_v20  ;;  %v26_v26 = vld [vmem:[%s389_s0 + $0x48] sm:$0xf]  ;;  %v236_v27 = vld [vmem:[%s389_s0 + $0x98] sm:$0xf] }
   0x7   :  { %245 = vmatprep.subr.bf16.mxu0 %v244_v18  ;;  %v254_v25 = vpack.c.bf16 %v233_v24, %v231_v22  ;;  %v16_v28 = vld [vmem:[%s391_s2] sm:$0xff] }
   0x8   :  { %253 = vmatprep.subr.bf16.mxu1 %v252_v19 }
   0x9   :  { %8 = vsyncpa [#allocation3], 0  ;;  %247 = vmatpush1.bf16.msra.mxu0 %v246_v23  ;;  %29 = vperm.xlu0 %261, %v16_v28   ;;  %v25_v29 = vld [vmem:[%s389_s0 + $0x40] sm:$0xf]  ;;  %v235_v30 = vld [vmem:[%s389_s0 + $0x90] sm:$0xf] }
   0xa   :  { %255 = vmatpush1.bf16.msra.mxu1 %v254_v25  ;;  %224 = vmatprep.subr.msk.mxu0 %vm36_vm0, %v26_v26  ;;  %v15_v31 = vld [vmem:[%s390_s1] sm:$0xff]  ;;  %vm32_vm1 = vcmask 293888   ;;  %s288_s2 = smov [#allocation2]   ;;  %vm115_vm2 = vcmask 556032  }
   0xb   :  { %237 = vmatprep.subr.msk.mxu1 %vm36_vm0, %v236_v27  ;;  %s213_s29 = sshll.u32 %s288_s2, 4  ;;  %s214_s29 = int_to_ptr.vmem [resolvable:$true] %s213_s29 }
   0xc   :  { %s262_s0 = scalar_lea.vmem %s214_s29, 512  ;;  %p267_p1 = scmp.lt.s32.totalorder %s214_s29, %s214_s29 }
   0xd   :  { %225 = vmatpush1.msk.msra.mxu0 %vm36_vm0, %v25_v29  ;;  %p263_p0 = scmp.ne.s32.totalorder %s214_s29, %s262_s0  ;;  %p268_p2 = scmp.lt.s32.totalorder %s262_s0, %s262_s0 }
   0xe   :  { %238 = vmatpush1.msk.msra.mxu1 %vm36_vm0, %v235_v30  ;;  %226 = vmatmul.mubr.msk.f32.vlgmr.msra.gmra.mrb[0].mxu0 %vm32_vm1, %v15_v31 }
   0xf   :  { %239 = vmatmul.mubr.msk.f32.vlgmr.msra.gmra.mrb[0].mxu1 %vm32_vm1, %v15_v31  ;;  %p269_p3 = por %p268_p2, %p267_p1 }
  0x11   :  { %p270_p4 = pnand %p269_p3, %p263_p0 }
  0x88   :  { %v30_v32 = vpop.permute.xlu0 %29 }
  0xe1   :  { %v109_v33 = vpop.f32.mrb[0].mxu0 }
  0xe2   :  { %v110_v34 = vadd.f32 %v109_v33, %v30_v32  ;;  %v200_v35 = vpop.f32.mrb[0].mxu1  ;;  %v111_v36 = vpop.f32.mrb[1].mxu0 }
  0xe3   :  { %v201_v37 = vadd.f32 %v200_v35, %v30_v32  ;;  %v112_v38 = vadd.f32 %v111_v36, %v30_v32  ;;  %v202_v39 = vpop.f32.mrb[1].mxu1 }
  0xe4   :  { %114 = vst [vmem:[#allocation2] sm:$0xff] %v110_v34  ;;  %v203_v40 = vadd.f32 %v202_v39, %v30_v32 }
  0xe5   :  { %206 = vst [vmem:[#allocation2 + $0x10] sm:$0xff] %v201_v37  ;;  %116 = vst.msk [vmem:[#allocation2 + $0x8] sm:$0xff] %vm115_vm2, %v112_v38 }
  0xe6   :  { %207 = vst.msk [vmem:[#allocation2 + $0x18] sm:$0xff] %vm115_vm2, %v203_v40 }
  0xe7   :  { %273 = shalt.err (!%p270_p4)
}
  0xe8   :  { %s274_s4 = scalar_lea.hbm %s392_s3, 512 }
  0xe9   :  { %p275_p5 = scmp.ne.s32.totalorder %s392_s3, %s274_s4  ;;  %p278_p6 = scmp.lt.u32.totalorder %s274_s4, %s392_s3 }
  0xeb   :  { %p280_p7 = pnand %p278_p6, %p275_p5 }
  0xed   :  { %283 = shalt.err (!%p280_p7)
}
  0xee   :  { %s289_s9 = smov 256   ;;  %s290_s10 = smov 16  }
  0xef   :  { %219 = dma.vmem_to_hbm [thread:$0]  %s214_s29, 512, %s392_s3, [#allocation3], %s289_s9, %s289_s9, %s290_s10  }
  0xf0   :  { %284 = dma.done.wait [#allocation3], 512  }
  0xf1   :  { %285 = vsyncadd [#allocation3], 4294966784 }
  0xf2   :  { %223 = vsyncpa [#allocation3], 1 }

</bundles_post_ra>
